<compile_context>
chip_gen: v7x
topology: tpu7x:2x2x1
jax: 0.10.0
libtpu: 0.0.40
codegen_flags: <defaults>
</compile_context>

<pallas_src>
import math

import jax
import jax.numpy as jnp
from jax.experimental import pallas as pl
from jax.experimental.pallas import tpu as pltpu


def _drop_path_kernel(x_ref, m_ref, o_ref):
    # x_ref: (TR, TF) in x.dtype, m_ref: (TR, 1) float32 -> broadcast multiply.
    o_ref[...] = (x_ref[...] * m_ref[...]).astype(o_ref.dtype)


def _round_up(a: int, m: int) -> int:
    return ((a + m - 1) // m) * m


def _pick_sub(batch: int, feat: int, itemsize: int) -> int:
    """Sublane-packing factor: x is reshaped to (batch*sub, feat//sub)."""
    preferred = {4: 8, 2: 16, 1: 32}.get(itemsize, 8)
    # Prefer factors that make the lane (last) dim a multiple of 128.
    for s in (preferred, 32, 16, 8, 4, 2):
        if s <= feat and feat % (s * 128) == 0:
            return s
    if feat % 128 == 0:
        return 1
    # Ragged feature count: only pack if the batch alone can't fill sublanes.
    if batch >= 8:
        return 1
    for s in (preferred, 8, 4, 2):
        if feat % s == 0:
            return s
    return 1


def _pick_tiles(R: int, F: int, itemsize: int, target_bytes: int):
    """Pick (TR, TF) so each x tile is ~target_bytes and the grid has >=2 blocks."""
    tr_seed = min(R, 8)
    # Lane (feature) tile: full extent if it fits the per-row budget, else the
    # largest 128-multiple (partial last block handled by Pallas OOB masking).
    per_row_budget = max(128, target_bytes // max(1, tr_seed * itemsize))
    if F <= per_row_budget:
        TF = F
    else:
        TF = max(128, (per_row_budget // 128) * 128)
    # Row tile: fill the remaining budget; multiple of 8 unless full extent.
    rows_budget = max(1, target_bytes // max(1, TF * itemsize))
    if rows_budget >= R or R <= 8:
        TR = R
    else:
        TR = max(8, (min(rows_budget, R) // 8) * 8)
    # Guarantee >= 2 grid blocks so both v7x TensorCores get work.
    if pl.cdiv(R, TR) * pl.cdiv(F, TF) < 2:
        if R > 8:
            TR = max(8, _round_up(-(-R // 2), 8))
        elif F >= 256:
            TF = _round_up(-(-F // 2), 128)
    return TR, TF


def drop_path_pallas(x, drop_prob: float = 0.0, training: bool = False,
                     scale_by_keep: bool = True, *, key=None,
                     target_bytes: int = 4 << 20, use_pallas=None):
    """Pallas implementation of timm-style drop_path (forward pass)."""
    if drop_prob == 0.0 or not training:
        return x
    keep_prob = 1.0 - drop_prob
    if key is None:
        key = jax.random.PRNGKey(0)

    B = x.shape[0]
    feat = int(math.prod(x.shape[1:])) if x.ndim > 1 else 1
    itemsize = jnp.dtype(x.dtype).itemsize

    # Per-sample mask in float32 so 1/keep_prob is not truncated for
    # low-precision activation dtypes; cast back after the multiply.
    keep = jax.random.bernoulli(key, p=keep_prob, shape=(B,))
    scale = (1.0 / keep_prob) if (scale_by_keep and keep_prob > 0.0) else 1.0
    mask = keep.astype(jnp.float32) * jnp.float32(scale)  # (B,)

    total_bytes = x.size * itemsize
    if use_pallas is None:
        use_pallas = total_bytes >= (1 << 20)
    if not use_pallas:
        # Tiny activations: XLA's fused broadcast-multiply is strictly faster
        # than the pallas_call launch + per-step overhead.
        bshape = (B,) + (1,) * (x.ndim - 1)
        return (x * mask.reshape(bshape)).astype(x.dtype)

    sub = _pick_sub(B, feat, itemsize)
    F = feat // sub
    R = B * sub
    x2 = x.reshape(R, F)
    mask2 = jnp.repeat(mask, sub).reshape(R, 1)  # (R, 1) float32, per-row mask

    TR, TF = _pick_tiles(R, F, itemsize, target_bytes)
    grid = (pl.cdiv(R, TR), pl.cdiv(F, TF))

    out = pl.pallas_call(
        _drop_path_kernel,
        out_shape=jax.ShapeDtypeStruct((R, F), x.dtype),
        grid=grid,
        in_specs=[
            pl.BlockSpec((TR, TF), lambda i, j: (i, j)),
            pl.BlockSpec((TR, 1), lambda i, j: (i, 0)),
        ],
        out_specs=pl.BlockSpec((TR, TF), lambda i, j: (i, j)),
        compiler_params=pltpu.CompilerParams(
            # Independent tiles -> both axes parallel (uses both v7x TCs).
            dimension_semantics=("parallel", "parallel"),
            # ~4x 4 MiB double-buffered tiles + mask fits with headroom; an
            # explicit limit keeps v5e's 16 MiB default from rejecting it and
            # stays well under v7x's 64 MiB physical VMEM.
            vmem_limit_bytes=32 << 20,
        ),
        cost_estimate=pl.CostEstimate(
            flops=R * F,
            transcendentals=0,
            bytes_accessed=2 * R * F * itemsize + grid[1] * R * 4,
        ),
    )(x2, mask2)

    return out.reshape(x.shape)


class DropPath:
    """Mirror of the PyTorch DropPath module (forward pass only)."""

    def __init__(self, drop_prob: float = 0.0, scale_by_keep: bool = True):
        self.drop_prob = drop_prob
        self.scale_by_keep = scale_by_keep
        self.training = True

    def __call__(self, x, seed: int = 0, key=None, **kwargs):
        if key is None:
            key = jax.random.PRNGKey(seed)
        return drop_path_pallas(
            x, self.drop_prob, self.training, self.scale_by_keep, key=key,
            **kwargs,
        )


def _check_per_sample(y, x, keep_prob):
    """Each sample must be all-zero or exactly x / keep_prob."""
    for b in range(x.shape[0]):
        zero_ok = bool(jnp.allclose(y[b], 0.0))
        keep_ok = bool(
            jnp.allclose(y[b], x[b] / keep_prob, rtol=1e-5, atol=1e-5))
        assert zero_ok or keep_ok, "per-sample mask semantics violated"


if __name__ == "__main__":
    key = jax.random.PRNGKey(0)
    B, C, H, W = 2, 4, 16, 16  # NCHW, C*H*W = 1024
    x = jax.random.normal(key, (B, C, H, W), dtype=jnp.float32)

    # Eval / drop_prob=0 path: identity.
    mod_eval = DropPath(drop_prob=0.3)
    mod_eval.training = False
    y_eval = jax.block_until_ready(mod_eval(x))
    assert jnp.allclose(y_eval, x)

    # Training path through the Pallas kernel (forced past the tiny-input
    # XLA fast path so the kernel actually runs at these small shapes).
    mod = DropPath(drop_prob=0.3, scale_by_keep=True)
    mod.training = True
    y = jax.block_until_ready(mod(x, seed=123, use_pallas=True))
    _check_per_sample(y, x, keep_prob=0.7)

    # Fast path (auto) must agree in semantics too.
    y_fast = jax.block_until_ready(mod(x, seed=123))
    _check_per_sample(y_fast, x, keep_prob=0.7)

    # Ragged feature count (3*20*20 = 1200, not a multiple of 128).
    x3 = jax.random.normal(jax.random.PRNGKey(1), (2, 3, 20, 20),
                           dtype=jnp.float32)
    y3 = jax.block_until_ready(
        drop_path_pallas(x3, 0.5, True, True, key=jax.random.PRNGKey(7),
                         use_pallas=True))
    _check_per_sample(y3, x3, keep_prob=0.5)

    # Force tiny tiles so the cdiv grid produces a partial (masked) last
    # feature block, exercising the OOB-write-discard path.
    y3b = jax.block_until_ready(
        drop_path_pallas(x3, 0.5, True, True, key=jax.random.PRNGKey(7),
                         use_pallas=True, target_bytes=4096))
    _check_per_sample(y3b, x3, keep_prob=0.5)
    assert jnp.allclose(y3, y3b)

    print("KERNEL_OK")
</pallas_src>

<mosaic_0001>
module attributes {stable_mosaic.version = 11 : i64} {
  func.func @_drop_path_kernel(%arg0: i32, %arg1: i32, %arg2: memref<8x128xf32, #tpu.memory_space<vmem>>, %arg3: memref<8x1xf32, #tpu.memory_space<vmem>>, %arg4: memref<8x128xf32, #tpu.memory_space<vmem>>) attributes {dimension_semantics = [#tpu.dimension_semantics<parallel>, #tpu.dimension_semantics<parallel>], iteration_bounds = array<i64: 2, 1>, scalar_prefetch = 0 : i64, scratch_operands = 0 : i64, tpu.core_type = #tpu.core_type<tc>, window_params = [{transform_indices = @transform_0, window_bounds = array<i64: 8, 128>}, {transform_indices = @transform_1, window_bounds = array<i64: 8, 1>}, {transform_indices = @transform_2, window_bounds = array<i64: 8, 128>}]} {
    %c0 = arith.constant 0 : index
    %c0_0 = arith.constant 0 : index
    %0 = vector.load %arg2[%c0, %c0_0] : memref<8x128xf32, #tpu.memory_space<vmem>>, vector<8x128xf32>
    %c0_1 = arith.constant 0 : index
    %c0_2 = arith.constant 0 : index
    %1 = vector.load %arg3[%c0_1, %c0_2] : memref<8x1xf32, #tpu.memory_space<vmem>>, vector<8x1xf32>
    %2 = vector.broadcast %1 : vector<8x1xf32> to vector<8x128xf32>
    %3 = arith.mulf %0, %2 : vector<8x128xf32>
    %c0_3 = arith.constant 0 : index
    %c0_4 = arith.constant 0 : index
    %4 = vector.load %arg4[%c0_3, %c0_4] : memref<8x128xf32, #tpu.memory_space<vmem>>, vector<8x128xf32>
    tpu.vector_store %arg4[%c0_3, %c0_4], %3 {strides = array<i32>} : memref<8x128xf32, #tpu.memory_space<vmem>>, vector<8x128xf32>,
    return
  }
  func.func @transform_0(%arg0: i32, %arg1: i32) -> (i32, i32) {
    %c0_i32 = arith.constant 0 : i32
    return %arg0, %arg1 : i32, i32
  }
  func.func @transform_1(%arg0: i32, %arg1: i32) -> (i32, i32) {
    %c0_i32 = arith.constant 0 : i32
    %c0_i32_0 = arith.constant 0 : i32
    return %arg0, %c0_i32 : i32, i32
  }
  func.func @transform_2(%arg0: i32, %arg1: i32) -> (i32, i32) {
    %c0_i32 = arith.constant 0 : i32
    return %arg0, %arg1 : i32, i32
  }
}

</mosaic_0001>

<bundles_post_ra>
// kernel: tpu_custom_call.1
= control target key start
LH: loop header
LB: loop body
LE: loop exit
PB: predicated region body
PF: predicated region fallthrough
CT: control target
= control target key end

     0   :  { %7 = vsyncpa [#allocation3], 0  ;;  %s569_s0 = inlined_call_operand.vmem [shape: f32[16,128], index: 0, kind: input, shape index: {}]   ;;  %s570_s1 = inlined_call_operand.vmem [shape: f32[16,1], index: 1, kind: input, shape index: {}]   ;;  %s571_s2 = inlined_call_operand.hbm [shape: f32[16,128], index: 2, kind: output, shape index: {}]  }
   0x1   :  { %9 = vsyncpa [#allocation3 + $0x1], 0  ;;  %s454_s9 = smov 0   ;;  %s456_s10 = smov 0  }
   0x2   :  { %s458_s11 = smov 0   ;;  %s460_s12 = smov 0  }
   0x3   :  { %s462_s13 = smov 0   ;;  %s464_s14 = smov 0  }
   0x4 LB: > { %s288_s15 = sadd.s32 4294967295, %s435_s14   ;;  %s289_s16 = sadd.s32 4294967294, %s435_s14   ;;  %s435_s14 = sphi %s464_s14, %s15_s14   ;;  %s431_s13 = sphi %s462_s13, %s578_s13   ;;  %s427_s12 = sphi %s460_s12, %s577_s12   ;;  %s423_s11 = sphi %s458_s11, %s576_s11   ;;  %s419_s10 = sphi %s456_s10, %s575_s10   ;;  %s415_s9 = sphi %s454_s9, %s574_s9  }
   0x5   : > { %s27_s17 = sadd.s32 1, %s431_s13  ;;  %s90_s18 = sadd.s32 1, %s423_s11 }
   0x6   : > { %p29_p0 = scmp.ge.s32.totalorder %s27_s17, 2  ;;  %p100_p1 = scmp.ne.s32.totalorder %s423_s11, %s419_s10 }
   0x7   : > { %p101_p2 = scmp.eq.s32.totalorder %s288_s15, 1  ;;  %p106_p3 = scmp.ne.s32.totalorder %s419_s10, %s415_s9 }
   0x8   : > { %s580_s17 = smov (%p29_p0, %s27_s17), 0  ;;  %p107_p5 = scmp.eq.s32.totalorder %s289_s16, 1 }
   0x9   : > { %p494_p4 = por %p101_p2, %p100_p1  ;;  %s85_s20 = ssub.s32 %s431_s13, %s580_s17 }
   0xa   : > { %p292_p6 = scmp.ge.s32.totalorder %s435_s14, 1  ;;  %p88_p7 = scmp.eq.s32.totalorder %s85_s20, 0 }
   0xb   : > { %p501_p8 = por %p107_p5, %p106_p3  ;;  %p142_p9 = scmp.lt.s32.totalorder %s435_s14, 3 }
   0xc   : > { %s507_s22 = scalar_select %p88_p7, %s423_s11, %s90_s18  }
   0xd   : > { %p143_p10 = pnand %p292_p6, %p142_p9 }
   0xe   : > { %p170_p11 = scmp.lt.s32.totalorder (!%p143_p10), %s427_s12, 1  ;;  %v437_v0 = vmov (!%p143_p10), 0   ;;  %s167_s28 = sand.u32 (!%p143_p10), 1, %s419_s10  }
   0xf   : > { %146 = sbr.rel (%p143_p10) target bundleno = 171 (0xab), region = 28  ;;  %356 = vset.pattern.permute.xlu0 (!%p143_p10), %v437_v0  ;;  %s293_s29 = sshll.u32 (!%p143_p10), %s167_s28, 3 }
  0x10   : > { %s297_s5 = sshll.u32 (!%p143_p10), %s427_s12, 7  ;;  %s169_s6 = scalar_lea.vmem (!%p143_p10), [#allocation2], %s293_s29 }
  0x11   : > { %s205_s7 = sshll.u32 (!%p143_p10), %s169_s6, 4  ;;  %s522_s16 = scalar_lea.hbm (!%p143_p10), %s571_s2, %s297_s5  ;;  %s524_s7 = int_to_ptr.vmem [resolvable:$true] %s205_s7 }
  0x12   : > { %s191_s18 = scalar_lea.sflag (!%p143_p10), [#allocation3], %s167_s28  ;;  %s357_s20 = scalar_lea.vmem (!%p143_p10), %s524_s7, 128 }
  0x13   : > { %p358_p12 = scmp.ne.s32.totalorder (!%p143_p10), %s524_s7, %s357_s20 }
  0x15   : > { %p359_p13 = pnand (!%p143_p10), %p358_p12, %p494_p4 }
  0x16   : > { %s171_s23 = scalar_select %p170_p11, %s427_s12, 1 }
  0x17   : > { %p360_p0 = pneg %p359_p13  ;;  %s438_s12 = smov [#allocation2]  }
  0x18   : > { %s294_s24 = sshll.u32 %s171_s23, 3  ;;  %s361_s23 = sshll.u32 %s438_s12, 4  ;;  %s362_s23 = int_to_ptr.vmem [resolvable:$false] %s361_s23 }
  0x19   : > { %s180_s27 = scalar_lea.vmem %s570_s1, %s294_s24  ;;  %s176_s4 = scalar_lea.vmem %s569_s0, %s294_s24 }
  0x1a   : > { %v182_v1 = vld [vmem:[%s180_s27] sm:$0xff]  ;;  %s363_s24 = scalar_lea.vmem %s362_s23, 256  ;;  %p364_p1 = scmp.lt.s32.totalorder %s524_s7, %s362_s23 }
  0x1b   : > { %185 = vperm.xlu0 %356, %v182_v1   ;;  %v181_v2 = vld [vmem:[%s176_s4] sm:$0xff]  ;;  %p365_p2 = scmp.lt.s32.totalorder %s363_s24, %s357_s20 }
  0x1d   : > { %p366_p3 = por %p365_p2, %p364_p1 }
  0x1f   : > { %p367_p5 = pnand %p366_p3, %p360_p0 }
  0x9a   : > { %v186_v3 = vpop.permute.xlu0 %185 }
  0x9b   : > { %v188_v4 = vmul.f32 %v186_v3, %v181_v2 }
  0x9d   : > { %189 = vst [vmem:[%s169_s6] sm:$0xff] %v188_v4 }
  0x9e   : > { %370 = shalt.err (!%p367_p5)
}
  0x9f   : > { %s371_s25 = scalar_lea.hbm %s522_s16, 128  ;;  %s375_s28 = scalar_lea.hbm %s571_s2, 256 }
  0xa0   : > { %p372_p6 = scmp.ne.s32.totalorder %s522_s16, %s371_s25  ;;  %p376_p10 = scmp.lt.u32.totalorder %s522_s16, %s571_s2 }
  0xa1   : > { %p377_p11 = scmp.lt.u32.totalorder %s375_s28, %s371_s25  ;;  %p379_p13 = scmp.lt.u32.totalorder %s371_s25, %s522_s16 }
  0xa2   : > { %p373_p7 = pnand %p372_p6, %p494_p4 }
  0xa3   : > { %p378_p12 = por %p377_p11, %p376_p10 }
  0xa4   : > { %p374_p9 = pneg %p373_p7 }
  0xa5   : > { %p380_p0 = por %p379_p13, %p378_p12 }
  0xa7   : > { %p381_p1 = pnand %p380_p0, %p374_p9 }
  0xa9   : > { %384 = shalt.err (!%p381_p1)
}
  0xaa   : > { %300 = dma.vmem_to_hbm [thread:$0]  (%p494_p4), %s524_s7, 128, %s522_s16, %s191_s18  }
  0xab PF: > { %p306_p2 = scmp.ge.s32.totalorder %s435_s14, 2  ;;  %s217_s3 = sand.u32 1, %s415_s9  }
  0xac   : > { %s218_s4 = scalar_lea.sflag [#allocation3], %s217_s3 }
  0xad   : > { %p303_p3 = pnand %p306_p2, %p501_p8 }
  0xaf   : > { %410 = dma.done.wait (!%p303_p3), %s218_s4, 128  }
  0xb0   : > { %412 = vsyncadd (!%p303_p3), %s218_s4, 4294967168  ;;  %s15_s14 = sadd.s32 1, %s435_s14   ;;  %s574_s9 = smov %s419_s10 }
  0xb1   : > { %p12_p5 = scmp.ge.s32.totalorder %s15_s14, 4   ;;  %s575_s10 = smov %s423_s11 }
  0xb2   : > { %s576_s11 = smov %s507_s22  ;;  %s577_s12 = smov %s431_s13 }
  0xb3   : > { %s578_s13 = smov %s580_s17  ;;  %14 = sbr.rel (!%p12_p5) target bundleno = 4 (0x4), region = 66 }
  0xba   :  { %223 = vsyncpa [#allocation3], 1 }
  0xbb   :  { %225 = vsyncpa [#allocation3 + $0x1], 1 }

</bundles_post_ra>
